<compile_context>
chip_gen: v7x
topology: tpu7x:2x2x1
jax: 0.10.0
libtpu: 0.0.40
codegen_flags: <defaults>
</compile_context>

<pallas_src>
import jax
import jax.numpy as jnp
from jax.experimental import pallas as pl
from jax.experimental.pallas import tpu as pltpu

LN_EPS = 1e-5


def _round_up(n, m):
    return ((n + m - 1) // m) * m


def _layernorm(h, gamma, beta):
    # biased variance + eps inside rsqrt, matching torch.nn.LayerNorm
    mu = jnp.mean(h, axis=-1, keepdims=True)
    var = jnp.mean((h - mu) * (h - mu), axis=-1, keepdims=True)
    return (h - mu) * jax.lax.rsqrt(var + LN_EPS) * gamma + beta


def dueling_q_kernel(x_ref, w1_ref, aux1_ref, w2_ref, aux2_ref, wq_ref, bq_ref, q_ref):
    x = x_ref[...]                       # (TB, F)  bf16
    aux1 = aux1_ref[...]                 # (3, H0)  f32  rows: [bias, gamma, beta]
    aux2 = aux2_ref[...]                 # (3, H1)  f32

    # fc1 -> LayerNorm -> ReLU   (MXU in bf16, accumulate & normalize in f32)
    h = jnp.dot(x, w1_ref[...], preferred_element_type=jnp.float32) + aux1[0:1, :]
    h = jnp.maximum(_layernorm(h, aux1[1:2, :], aux1[2:3, :]), 0.0)

    # fc2 -> LayerNorm -> ReLU
    h = jnp.dot(h.astype(jnp.bfloat16), w2_ref[...],
                preferred_element_type=jnp.float32) + aux2[0:1, :]
    h = jnp.maximum(_layernorm(h, aux2[1:2, :], aux2[2:3, :]), 0.0)

    # Fused dueling head: q = h @ W_q + b_q  (value/advantage/mean folded offline)
    q_ref[...] = (
        jnp.dot(h.astype(jnp.bfloat16), wq_ref[...],
                preferred_element_type=jnp.float32)
        + bq_ref[...]
    )


def dueling_q_forward(x, params, *, batch_tile=512):
    """x: (B, input_size) f32/bf16. params: dict produced by pack_params()."""
    B, F = x.shape
    A = params["n_actions"]
    w1, aux1 = params["w1"], params["aux1"]
    w2, aux2 = params["w2"], params["aux2"]
    wq, bq = params["wq"], params["bq"]
    A_pad = wq.shape[1]

    # Batch tile: multiple of 8 sublanes, large enough (<=512) to amortize
    # per-step overhead; pad the batch up to a whole number of tiles.
    TB = min(batch_tile, _round_up(B, 8))
    B_pad = _round_up(B, TB)
    if B_pad != B:
        x = jnp.pad(x, ((0, B_pad - B), (0, 0)))
    x = x.astype(jnp.bfloat16)

    const = lambda i: (0, 0)  # weights stay resident in VMEM across batch tiles

    q_pad = pl.pallas_call(
        dueling_q_kernel,
        out_shape=jax.ShapeDtypeStruct((B_pad, A_pad), jnp.float32),
        grid=(B_pad // TB,),
        in_specs=[
            pl.BlockSpec((TB, F), lambda i: (i, 0)),   # x: pipelined over batch
            pl.BlockSpec(w1.shape, const),
            pl.BlockSpec(aux1.shape, const),
            pl.BlockSpec(w2.shape, const),
            pl.BlockSpec(aux2.shape, const),
            pl.BlockSpec(wq.shape, const),
            pl.BlockSpec(bq.shape, const),
        ],
        out_specs=pl.BlockSpec((TB, A_pad), lambda i: (i, 0)),  # lane-dense store
        compiler_params=pltpu.CompilerParams(dimension_semantics=("parallel",)),
    )(x, w1, aux1, w2, aux2, wq, bq)

    return q_pad[:B, :A]


def init_raw_params(key, input_size, hidden_sizes, output_size):
    """PyTorch-style params (Linear weights stored transposed as (in, out), f32)."""
    h0, h1 = hidden_sizes
    ks = jax.random.split(key, 8)

    def linear(kw, kb, fan_in, fan_out):
        bound = 1.0 / jnp.sqrt(fan_in)
        w = jax.random.uniform(kw, (fan_in, fan_out), jnp.float32, -bound, bound)
        b = jax.random.uniform(kb, (1, fan_out), jnp.float32, -bound, bound)
        return w, b

    w1, b1 = linear(ks[0], ks[1], input_size, h0)
    w2, b2 = linear(ks[2], ks[3], h0, h1)
    wv, bv = linear(ks[4], ks[5], h1, 1)
    wa, ba = linear(ks[6], ks[7], h1, output_size)

    return dict(
        w1=w1, b1=b1, g1=jnp.ones((1, h0), jnp.float32), be1=jnp.zeros((1, h0), jnp.float32),
        w2=w2, b2=b2, g2=jnp.ones((1, h1), jnp.float32), be2=jnp.zeros((1, h1), jnp.float32),
        wv=wv, bv=bv, wa=wa, ba=ba,
    )


def pack_params(raw, output_size, lane_pad=128):
    """Fold dueling head, pad output lanes to 128, pack LN vectors, cast matmul weights to bf16."""
    A = output_size
    A_pad = _round_up(A, lane_pad)

    # q = v + a - mean_A(a) is linear in h2  =>  single (H1, A) matmul.
    wq = raw["wa"] + (raw["wv"] - jnp.mean(raw["wa"], axis=1, keepdims=True))  # (H1, A)
    bq = raw["ba"] + raw["bv"] - jnp.mean(raw["ba"])                            # (1, A)

    H1 = wq.shape[0]
    wq_pad = jnp.zeros((H1, A_pad), jnp.float32).at[:, :A].set(wq)
    bq_pad = jnp.zeros((1, A_pad), jnp.float32).at[:, :A].set(bq)

    return dict(
        n_actions=A,
        w1=raw["w1"].astype(jnp.bfloat16),
        aux1=jnp.concatenate([raw["b1"], raw["g1"], raw["be1"]], axis=0),  # (3, H0) f32
        w2=raw["w2"].astype(jnp.bfloat16),
        aux2=jnp.concatenate([raw["b2"], raw["g2"], raw["be2"]], axis=0),  # (3, H1) f32
        wq=wq_pad.astype(jnp.bfloat16),
        bq=bq_pad,                                                          # (1, 128) f32
    )


def reference_forward(x, p):
    """Pure-JAX f32 reference with exact PyTorch DuelingQNetwork semantics."""
    def ln(h, g, b):
        mu = jnp.mean(h, axis=-1, keepdims=True)
        var = jnp.mean((h - mu) ** 2, axis=-1, keepdims=True)
        return (h - mu) / jnp.sqrt(var + LN_EPS) * g + b

    h = jnp.maximum(ln(x @ p["w1"] + p["b1"], p["g1"], p["be1"]), 0.0)
    h = jnp.maximum(ln(h @ p["w2"] + p["b2"], p["g2"], p["be2"]), 0.0)
    v = h @ p["wv"] + p["bv"]
    a = h @ p["wa"] + p["ba"]
    return v + (a - jnp.mean(a, axis=1, keepdims=True))


if __name__ == "__main__":
    key = jax.random.PRNGKey(0)
    kx, kp = jax.random.split(key)

    batch = 8                    # multiple of 8 sublanes (wrapper pads otherwise)
    input_size = 16
    hidden_sizes = (32, 32)
    output_size = 6

    x = jax.random.normal(kx, (batch, input_size), jnp.float32)
    raw = init_raw_params(kp, input_size, hidden_sizes, output_size)
    params = pack_params(raw, output_size)

    q = dueling_q_forward(x, params)
    q = jax.block_until_ready(q)

    q_ref = reference_forward(x, raw)
    assert q.shape == (batch, output_size)
    # bf16 matmul operands => loosened tolerance vs the f32 reference.
    assert jnp.allclose(q, q_ref, atol=5e-2, rtol=5e-2), "mismatch vs JAX reference"

    print("KERNEL_OK")
</pallas_src>

<mosaic_0001>
module attributes {stable_mosaic.version = 11 : i64} {
  func.func @dueling_q_kernel(%arg0: i32, %arg1: memref<8x16xbf16, #tpu.memory_space<vmem>>, %arg2: memref<16x32xbf16, #tpu.memory_space<vmem>>, %arg3: memref<3x32xf32, #tpu.memory_space<vmem>>, %arg4: memref<32x32xbf16, #tpu.memory_space<vmem>>, %arg5: memref<3x32xf32, #tpu.memory_space<vmem>>, %arg6: memref<32x128xbf16, #tpu.memory_space<vmem>>, %arg7: memref<1x128xf32, #tpu.memory_space<vmem>>, %arg8: memref<8x128xf32, #tpu.memory_space<vmem>>) attributes {dimension_semantics = [#tpu.dimension_semantics<parallel>], iteration_bounds = array<i64: 1>, scalar_prefetch = 0 : i64, scratch_operands = 0 : i64, tpu.core_type = #tpu.core_type<tc>, window_params = [{transform_indices = @transform_0, window_bounds = array<i64: 8, 16>}, {pipeline_mode = #tpu.pipeline_mode<synchronous>, transform_indices = @transform_1, window_bounds = array<i64: 16, 32>}, {pipeline_mode = #tpu.pipeline_mode<synchronous>, transform_indices = @transform_2, window_bounds = array<i64: 3, 32>}, {pipeline_mode = #tpu.pipeline_mode<synchronous>, transform_indices = @transform_3, window_bounds = array<i64: 32, 32>}, {pipeline_mode = #tpu.pipeline_mode<synchronous>, transform_indices = @transform_4, window_bounds = array<i64: 3, 32>}, {pipeline_mode = #tpu.pipeline_mode<synchronous>, transform_indices = @transform_5, window_bounds = array<i64: 32, 128>}, {pipeline_mode = #tpu.pipeline_mode<synchronous>, transform_indices = @transform_6, window_bounds = array<i64: 1, 128>}, {transform_indices = @transform_7, window_bounds = array<i64: 8, 128>}]} {
    %c0 = arith.constant 0 : index
    %c0_0 = arith.constant 0 : index
    %0 = vector.load %arg1[%c0, %c0_0] : memref<8x16xbf16, #tpu.memory_space<vmem>>, vector<8x16xbf16>
    %c0_1 = arith.constant 0 : index
    %c0_2 = arith.constant 0 : index
    %1 = vector.load %arg3[%c0_1, %c0_2] : memref<3x32xf32, #tpu.memory_space<vmem>>, vector<3x32xf32>
    %c0_3 = arith.constant 0 : index
    %c0_4 = arith.constant 0 : index
    %2 = vector.load %arg5[%c0_3, %c0_4] : memref<3x32xf32, #tpu.memory_space<vmem>>, vector<3x32xf32>
    %c0_5 = arith.constant 0 : index
    %c0_6 = arith.constant 0 : index
    %3 = vector.load %arg2[%c0_5, %c0_6] : memref<16x32xbf16, #tpu.memory_space<vmem>>, vector<16x32xbf16>
    %cst = arith.constant dense<0.000000e+00> : vector<8x32xf32>
    %4 = tpu.matmul %0, %3, %cst {dimension_numbers = #tpu.dot_dimension_numbers<[1], [0], [0], [1], [0, 0, 1, 1], [], []>} : vector<8x16xbf16>, vector<16x32xbf16>, vector<8x32xf32> -> vector<8x32xf32>
    %5 = vector.extract_strided_slice %1 {offsets = [0, 0], sizes = [1, 32], strides = [1, 1]} : vector<3x32xf32> to vector<1x32xf32>
    %6 = vector.broadcast %5 : vector<1x32xf32> to vector<8x32xf32>
    %7 = arith.addf %4, %6 : vector<8x32xf32>
    %8 = vector.extract_strided_slice %1 {offsets = [1, 0], sizes = [1, 32], strides = [1, 1]} : vector<3x32xf32> to vector<1x32xf32>
    %9 = vector.extract_strided_slice %1 {offsets = [2, 0], sizes = [1, 32], strides = [1, 1]} : vector<3x32xf32> to vector<1x32xf32>
    %cst_7 = arith.constant dense<0.000000e+00> : vector<8xf32>
    %10 = vector.multi_reduction <add>, %7, %cst_7 [1] : vector<8x32xf32> to vector<8xf32>
    %11 = vector.shape_cast %10 : vector<8xf32> to vector<8x1xf32>
    %cst_8 = arith.constant 3.200000e+01 : f32
    %12 = vector.broadcast %cst_8 : f32 to vector<8x1xf32>
    %13 = arith.divf %11, %12 : vector<8x1xf32>
    %14 = vector.broadcast %13 : vector<8x1xf32> to vector<8x32xf32>
    %15 = arith.subf %7, %14 : vector<8x32xf32>
    %16 = vector.broadcast %13 : vector<8x1xf32> to vector<8x32xf32>
    %17 = arith.subf %7, %16 : vector<8x32xf32>
    %18 = arith.mulf %15, %17 : vector<8x32xf32>
    %cst_9 = arith.constant dense<0.000000e+00> : vector<8xf32>
    %19 = vector.multi_reduction <add>, %18, %cst_9 [1] : vector<8x32xf32> to vector<8xf32>
    %20 = vector.shape_cast %19 : vector<8xf32> to vector<8x1xf32>
    %cst_10 = arith.constant 3.200000e+01 : f32
    %21 = vector.broadcast %cst_10 : f32 to vector<8x1xf32>
    %22 = arith.divf %20, %21 : vector<8x1xf32>
    %23 = vector.broadcast %13 : vector<8x1xf32> to vector<8x32xf32>
    %24 = arith.subf %7, %23 : vector<8x32xf32>
    %cst_11 = arith.constant 9.99999974E-6 : f32
    %25 = vector.broadcast %cst_11 : f32 to vector<8x1xf32>
    %26 = arith.addf %22, %25 : vector<8x1xf32>
    %27 = math.rsqrt %26 : vector<8x1xf32>
    %28 = vector.broadcast %27 : vector<8x1xf32> to vector<8x32xf32>
    %29 = arith.mulf %24, %28 : vector<8x32xf32>
    %30 = vector.broadcast %8 : vector<1x32xf32> to vector<8x32xf32>
    %31 = arith.mulf %29, %30 : vector<8x32xf32>
    %32 = vector.broadcast %9 : vector<1x32xf32> to vector<8x32xf32>
    %33 = arith.addf %31, %32 : vector<8x32xf32>
    %cst_12 = arith.constant 0.000000e+00 : f32
    %34 = vector.broadcast %cst_12 : f32 to vector<8x32xf32>
    %35 = arith.maximumf %33, %34 : vector<8x32xf32>
    %36 = arith.truncf %35 : vector<8x32xf32> to vector<8x32xbf16>
    %c0_13 = arith.constant 0 : index
    %c0_14 = arith.constant 0 : index
    %37 = vector.load %arg4[%c0_13, %c0_14] : memref<32x32xbf16, #tpu.memory_space<vmem>>, vector<32x32xbf16>
    %cst_15 = arith.constant dense<0.000000e+00> : vector<8x32xf32>
    %38 = tpu.matmul %36, %37, %cst_15 {dimension_numbers = #tpu.dot_dimension_numbers<[1], [0], [0], [1], [0, 0, 1, 1], [], []>} : vector<8x32xbf16>, vector<32x32xbf16>, vector<8x32xf32> -> vector<8x32xf32>
    %39 = vector.extract_strided_slice %2 {offsets = [0, 0], sizes = [1, 32], strides = [1, 1]} : vector<3x32xf32> to vector<1x32xf32>
    %40 = vector.broadcast %39 : vector<1x32xf32> to vector<8x32xf32>
    %41 = arith.addf %38, %40 : vector<8x32xf32>
    %42 = vector.extract_strided_slice %2 {offsets = [1, 0], sizes = [1, 32], strides = [1, 1]} : vector<3x32xf32> to vector<1x32xf32>
    %43 = vector.extract_strided_slice %2 {offsets = [2, 0], sizes = [1, 32], strides = [1, 1]} : vector<3x32xf32> to vector<1x32xf32>
    %cst_16 = arith.constant dense<0.000000e+00> : vector<8xf32>
    %44 = vector.multi_reduction <add>, %41, %cst_16 [1] : vector<8x32xf32> to vector<8xf32>
    %45 = vector.shape_cast %44 : vector<8xf32> to vector<8x1xf32>
    %cst_17 = arith.constant 3.200000e+01 : f32
    %46 = vector.broadcast %cst_17 : f32 to vector<8x1xf32>
    %47 = arith.divf %45, %46 : vector<8x1xf32>
    %48 = vector.broadcast %47 : vector<8x1xf32> to vector<8x32xf32>
    %49 = arith.subf %41, %48 : vector<8x32xf32>
    %50 = vector.broadcast %47 : vector<8x1xf32> to vector<8x32xf32>
    %51 = arith.subf %41, %50 : vector<8x32xf32>
    %52 = arith.mulf %49, %51 : vector<8x32xf32>
    %cst_18 = arith.constant dense<0.000000e+00> : vector<8xf32>
    %53 = vector.multi_reduction <add>, %52, %cst_18 [1] : vector<8x32xf32> to vector<8xf32>
    %54 = vector.shape_cast %53 : vector<8xf32> to vector<8x1xf32>
    %cst_19 = arith.constant 3.200000e+01 : f32
    %55 = vector.broadcast %cst_19 : f32 to vector<8x1xf32>
    %56 = arith.divf %54, %55 : vector<8x1xf32>
    %57 = vector.broadcast %47 : vector<8x1xf32> to vector<8x32xf32>
    %58 = arith.subf %41, %57 : vector<8x32xf32>
    %cst_20 = arith.constant 9.99999974E-6 : f32
    %59 = vector.broadcast %cst_20 : f32 to vector<8x1xf32>
    %60 = arith.addf %56, %59 : vector<8x1xf32>
    %61 = math.rsqrt %60 : vector<8x1xf32>
    %62 = vector.broadcast %61 : vector<8x1xf32> to vector<8x32xf32>
    %63 = arith.mulf %58, %62 : vector<8x32xf32>
    %64 = vector.broadcast %42 : vector<1x32xf32> to vector<8x32xf32>
    %65 = arith.mulf %63, %64 : vector<8x32xf32>
    %66 = vector.broadcast %43 : vector<1x32xf32> to vector<8x32xf32>
    %67 = arith.addf %65, %66 : vector<8x32xf32>
    %cst_21 = arith.constant 0.000000e+00 : f32
    %68 = vector.broadcast %cst_21 : f32 to vector<8x32xf32>
    %69 = arith.maximumf %67, %68 : vector<8x32xf32>
    %70 = arith.truncf %69 : vector<8x32xf32> to vector<8x32xbf16>
    %c0_22 = arith.constant 0 : index
    %c0_23 = arith.constant 0 : index
    %71 = vector.load %arg6[%c0_22, %c0_23] : memref<32x128xbf16, #tpu.memory_space<vmem>>, vector<32x128xbf16>
    %cst_24 = arith.constant dense<0.000000e+00> : vector<8x128xf32>
    %72 = tpu.matmul %70, %71, %cst_24 {dimension_numbers = #tpu.dot_dimension_numbers<[1], [0], [0], [1], [0, 0, 1, 1], [], []>} : vector<8x32xbf16>, vector<32x128xbf16>, vector<8x128xf32> -> vector<8x128xf32>
    %c0_25 = arith.constant 0 : index
    %c0_26 = arith.constant 0 : index
    %73 = vector.load %arg7[%c0_25, %c0_26] : memref<1x128xf32, #tpu.memory_space<vmem>>, vector<1x128xf32>
    %74 = vector.broadcast %73 : vector<1x128xf32> to vector<8x128xf32>
    %75 = arith.addf %72, %74 : vector<8x128xf32>
    %c0_27 = arith.constant 0 : index
    %c0_28 = arith.constant 0 : index
    %76 = vector.load %arg8[%c0_27, %c0_28] : memref<8x128xf32, #tpu.memory_space<vmem>>, vector<8x128xf32>
    tpu.vector_store %arg8[%c0_27, %c0_28], %75 {strides = array<i32>} : memref<8x128xf32, #tpu.memory_space<vmem>>, vector<8x128xf32>,
    return
  }
  func.func @transform_0(%arg0: i32) -> (i32, i32) {
    %c0_i32 = arith.constant 0 : i32
    %c0_i32_0 = arith.constant 0 : i32
    return %arg0, %c0_i32 : i32, i32
  }
  func.func @transform_1(%arg0: i32) -> (i32, i32) {
    %c0_i32 = arith.constant 0 : i32
    %c0_i32_0 = arith.constant 0 : i32
    %c0_i32_1 = arith.constant 0 : i32
    return %c0_i32, %c0_i32_0 : i32, i32
  }
  func.func @transform_2(%arg0: i32) -> (i32, i32) {
    %c0_i32 = arith.constant 0 : i32
    %c0_i32_0 = arith.constant 0 : i32
    %c0_i32_1 = arith.constant 0 : i32
    return %c0_i32, %c0_i32_0 : i32, i32
  }
  func.func @transform_3(%arg0: i32) -> (i32, i32) {
    %c0_i32 = arith.constant 0 : i32
    %c0_i32_0 = arith.constant 0 : i32
    %c0_i32_1 = arith.constant 0 : i32
    return %c0_i32, %c0_i32_0 : i32, i32
  }
  func.func @transform_4(%arg0: i32) -> (i32, i32) {
    %c0_i32 = arith.constant 0 : i32
    %c0_i32_0 = arith.constant 0 : i32
    %c0_i32_1 = arith.constant 0 : i32
    return %c0_i32, %c0_i32_0 : i32, i32
  }
  func.func @transform_5(%arg0: i32) -> (i32, i32) {
    %c0_i32 = arith.constant 0 : i32
    %c0_i32_0 = arith.constant 0 : i32
    %c0_i32_1 = arith.constant 0 : i32
    return %c0_i32, %c0_i32_0 : i32, i32
  }
  func.func @transform_6(%arg0: i32) -> (i32, i32) {
    %c0_i32 = arith.constant 0 : i32
    %c0_i32_0 = arith.constant 0 : i32
    %c0_i32_1 = arith.constant 0 : i32
    return %c0_i32, %c0_i32_0 : i32, i32
  }
  func.func @transform_7(%arg0: i32) -> (i32, i32) {
    %c0_i32 = arith.constant 0 : i32
    %c0_i32_0 = arith.constant 0 : i32
    return %arg0, %c0_i32 : i32, i32
  }
}

</mosaic_0001>

<bundles_post_ra>
// kernel: tpu_custom_call.1
= control target key start
LH: loop header
LB: loop body
LE: loop exit
PB: predicated region body
PF: predicated region fallthrough
CT: control target
= control target key end

     0   :  { %12 = vsyncpa [#allocation3], 0  ;;  %s696_s0 = inlined_call_operand.hbm [shape: bf16[8,16], index: 0, kind: input, shape index: {}]   ;;  %s697_s1 = inlined_call_operand.hbm [shape: bf16[16,32], index: 1, kind: input, shape index: {}]   ;;  %s698_s2 = inlined_call_operand.hbm [shape: f32[3,32], index: 2, kind: input, shape index: {}]   ;;  %s699_s3 = inlined_call_operand.hbm [shape: bf16[32,32], index: 3, kind: input, shape index: {}]   ;;  %s700_s4 = inlined_call_operand.hbm [shape: f32[3,32], index: 4, kind: input, shape index: {}]   ;;  %s701_s5 = inlined_call_operand.vmem [shape: bf16[32,128], index: 5, kind: input, shape index: {}]   ;;  %s702_s6 = inlined_call_operand.vmem [shape: f32[1,128], index: 6, kind: input, shape index: {}]   ;;  %s703_s7 = inlined_call_operand.hbm [shape: f32[8,128], index: 7, kind: output, shape index: {}]  }
   0x1   :  { %13 = vsyncpa [#allocation6], 0 }
   0x2   :  { %14 = vsyncpa [#allocation9], 0 }
   0x3   :  { %15 = vsyncpa [#allocation4], 0  ;;  %s546_s24 = smov [#allocation5]   ;;  %s406_s28 = scalar_lea.hbm %s697_s1, 128 }
   0x4   :  { %s31_s25 = sshll.u32 %s546_s24, 4  ;;  %p407_p0 = scmp.ne.s32.totalorder %s697_s1, %s406_s28  ;;  %s32_s25 = int_to_ptr.vmem [resolvable:$true] %s31_s25 }
   0x5   :  { %p410_p1 = scmp.lt.u32.totalorder %s406_s28, %s697_s1 }
   0x7   :  { %p412_p2 = pnand %p410_p1, %p407_p0 }
   0x9   :  { %415 = shalt.err (!%p412_p2)
}
   0xa   :  { %s416_s10 = scalar_lea.vmem %s32_s25, 128  ;;  %p421_p4 = scmp.lt.s32.totalorder %s32_s25, %s32_s25 }
   0xb   :  { %p417_p3 = scmp.ne.s32.totalorder %s32_s25, %s416_s10  ;;  %p422_p5 = scmp.lt.s32.totalorder %s416_s10, %s416_s10 }
   0xd   :  { %p423_p6 = por %p422_p5, %p421_p4 }
   0xf   :  { %p424_p7 = pnand %p423_p6, %p417_p3 }
  0x11   :  { %427 = shalt.err (!%p424_p7)
}
  0x12   :  { %s547_s11 = smov 64   ;;  %s548_s12 = smov 4  }
  0x13   :  { %37 = dma.hbm_to_vmem [thread:$0]  %s697_s1, 128, %s32_s25, [#allocation6], %s547_s11, %s547_s11, %s548_s12  }
  0x14   :  { %s549_s15 = smov [#allocation8]   ;;  %s550_s17 = smov [#allocation2]  }
  0x15   :  { %s53_s16 = sshll.u32 %s549_s15, 4  ;;  %s22_s18 = sshll.u32 %s550_s17, 4  ;;  %s54_s16 = int_to_ptr.vmem [resolvable:$true] %s53_s16  ;;  %s23_s18 = int_to_ptr.vmem [resolvable:$true] %s22_s18 }
  0x16   :  { %s428_s21 = scalar_lea.hbm %s699_s3, 256 }
  0x17   :  { %p429_p8 = scmp.ne.s32.totalorder %s699_s3, %s428_s21  ;;  %p432_p9 = scmp.lt.u32.totalorder %s428_s21, %s699_s3 }
  0x19   :  { %p434_p10 = pnand %p432_p9, %p429_p8 }
  0x1b   :  { %437 = shalt.err (!%p434_p10)
}
  0x1c   :  { %s438_s1 = scalar_lea.vmem %s54_s16, 256  ;;  %p443_p12 = scmp.lt.s32.totalorder %s54_s16, %s54_s16 }
  0x1d   :  { %p439_p11 = scmp.ne.s32.totalorder %s54_s16, %s438_s1  ;;  %p444_p13 = scmp.lt.s32.totalorder %s438_s1, %s438_s1 }
  0x1f   :  { %p445_p0 = por %p444_p13, %p443_p12 }
  0x21   :  { %p446_p1 = pnand %p445_p0, %p439_p11 }
  0x23   :  { %449 = shalt.err (!%p446_p1)
}
  0x24   :  { %59 = dma.hbm_to_vmem [thread:$0]  %s699_s3, 256, %s54_s16, [#allocation9], %s547_s11, %s547_s11, %s548_s12  }
  0x25   :  { %s450_s30 = scalar_lea.hbm %s696_s0, 64 }
  0x26   :  { %p451_p2 = scmp.ne.s32.totalorder %s696_s0, %s450_s30  ;;  %p454_p3 = scmp.lt.u32.totalorder %s450_s30, %s696_s0 }
  0x28   :  { %p456_p4 = pnand %p454_p3, %p451_p2 }
  0x2a   :  { %459 = shalt.err (!%p456_p4)
}
  0x2b   :  { %s460_s14 = scalar_lea.vmem %s23_s18, 64  ;;  %p465_p6 = scmp.lt.s32.totalorder %s23_s18, %s23_s18 }
  0x2c   :  { %p461_p5 = scmp.ne.s32.totalorder %s23_s18, %s460_s14  ;;  %p466_p7 = scmp.lt.s32.totalorder %s460_s14, %s460_s14 }
  0x2e   :  { %p467_p8 = por %p466_p7, %p465_p6 }
  0x30   :  { %p468_p9 = pnand %p467_p8, %p461_p5 }
  0x32   :  { %471 = shalt.err (!%p468_p9)
}
  0x33   :  { %25 = dma.hbm_to_vmem [thread:$0]  %s696_s0, 64, %s23_s18, [#allocation3]  }
  0x34   :  { %s551_s12 = smov [#allocation7]   ;;  %s552_s16 = smov [#allocation10]  }
  0x35   :  { %s44_s15 = sshll.u32 %s551_s12, 4  ;;  %s66_s17 = sshll.u32 %s552_s16, 4  ;;  %s45_s15 = int_to_ptr.vmem [resolvable:$true] %s44_s15  ;;  %s67_s17 = int_to_ptr.vmem [resolvable:$true] %s66_s17 }
  0x36   :  { %s472_s21 = scalar_lea.hbm %s698_s2, 64 }
  0x37   :  { %p473_p10 = scmp.ne.s32.totalorder %s698_s2, %s472_s21  ;;  %p476_p11 = scmp.lt.u32.totalorder %s472_s21, %s698_s2 }
  0x39   :  { %p478_p12 = pnand %p476_p11, %p473_p10 }
  0x3b   :  { %481 = shalt.err (!%p478_p12)
}
  0x3c   :  { %s482_s0 = scalar_lea.vmem %s45_s15, 64  ;;  %p487_p0 = scmp.lt.s32.totalorder %s45_s15, %s45_s15 }
  0x3d   :  { %p483_p13 = scmp.ne.s32.totalorder %s45_s15, %s482_s0  ;;  %p488_p1 = scmp.lt.s32.totalorder %s482_s0, %s482_s0 }
  0x3f   :  { %p489_p2 = por %p488_p1, %p487_p0 }
  0x41   :  { %p490_p3 = pnand %p489_p2, %p483_p13 }
  0x43   :  { %493 = shalt.err (!%p490_p3)
}
  0x44   :  { %47 = dma.hbm_to_vmem [thread:$0]  %s698_s2, 64, %s45_s15, [#allocation6]  }
  0x45   :  { %s494_s28 = scalar_lea.hbm %s700_s4, 64 }
  0x46   :  { %p495_p4 = scmp.ne.s32.totalorder %s700_s4, %s494_s28  ;;  %p498_p5 = scmp.lt.u32.totalorder %s494_s28, %s700_s4 }
  0x48   :  { %p500_p6 = pnand %p498_p5, %p495_p4 }
  0x4a   :  { %503 = shalt.err (!%p500_p6)
}
  0x4b   :  { %s504_s10 = scalar_lea.vmem %s67_s17, 64  ;;  %p509_p8 = scmp.lt.s32.totalorder %s67_s17, %s67_s17 }
  0x4c   :  { %p505_p7 = scmp.ne.s32.totalorder %s67_s17, %s504_s10  ;;  %p510_p9 = scmp.lt.s32.totalorder %s504_s10, %s504_s10 }
  0x4e   :  { %p511_p10 = por %p510_p9, %p509_p8 }
  0x50   :  { %p512_p11 = pnand %p511_p10, %p505_p7 }
  0x52   :  { %515 = shalt.err (!%p512_p11)
}
  0x53   :  { %69 = dma.hbm_to_vmem [thread:$0]  %s700_s4, 64, %s67_s17, [#allocation9]  }
  0x54   :  { %538 = dma.done.wait [#allocation3], 64  }
  0x55   :  { %539 = vsyncadd [#allocation3], 4294967232 }
  0x56   :  { %540 = dma.done.wait [#allocation6], 192  }
  0x57   :  { %541 = vsyncadd [#allocation6], 4294967104 }
  0x58   :  { %542 = dma.done.wait [#allocation9], 320  }
  0x59   :  { %543 = vsyncadd [#allocation9], 4294966976  ;;  %v553_v0 = vmov 0.0   ;;  %vm554_vm0 = vmmov 0   ;;  %v397_v1 = vld [vmem:[#allocation5] sm:$0xff]   ;;  %vm105_vm1 = vcmask 130048   ;;  %v95_v3 = vlaneseq }
  0x5a   :  { %365 = vmatprep.subr.bf16.mxu0 %v553_v0  ;;  %367 = vmatprep.mubr.msk.bf16.mxu0 %vm554_vm0, %v553_v0  ;;  %v90_v2 = vld [vmem:[#allocation2] sm:$0xf]  ;;  %v91_v6 = vld [vmem:[#allocation7] sm:$0x7]  ;;  %vm149_vm2 = vcmask 261120   ;;  %v398_v19 = vld [vmem:[#allocation8] sm:$0xff]  }
  0x5b   :  { %371 = vmatprep.subr.bf16.mxu1 %v553_v0  ;;  %375 = vmatprep.mubr.msk.bf16.mxu1 %vm554_vm0, %v553_v0  ;;  %v662_v4 = vshrl.u32 %v95_v3, 7  ;;  %v399_v20 = vld [vmem:[#allocation8 + $0x8] sm:$0xff]   ;;  %v92_v34 = vld [vmem:[#allocation10] sm:$0x7]  ;;  %v400_v47 = vld [vmem:[%s701_s5] sm:$0xff]  }
  0x5c   :  { %366 = vmatpush3.bf16.msra.mxu0 %v397_v1  ;;  %372 = vmatpush3.bf16.msra.mxu1 %v398_v19  ;;  %v401_v48 = vld [vmem:[%s701_s5 + $0x8] sm:$0xff]   ;;  %v353_v60 = vld [vmem:[%s702_s6] ss:$0 sm:$0xff]  ;;  %s555_s5 = smov [#allocation11]  }
  0x5d   :  { %379 = vmatprep.subr.bf16.mxu0 %v553_v0  ;;  %v97_v5 = vsub.s32 0, %v662_v4  ;;  %373 = vmatprep.subr.bf16.mxu1 %v553_v0  ;;  %v166_v24 = vsub.s32 1, %v662_v4  ;;  %v171_v25 = vsub.s32 2, %v662_v4  ;;  %s337_s16 = sshll.u32 %s555_s5, 4  ;;  %s338_s16 = int_to_ptr.vmem [resolvable:$true] %s337_s16 }
  0x5e   :  { %s516_s17 = scalar_lea.vmem %s338_s16, 128  ;;  %p521_p13 = scmp.lt.s32.totalorder %s338_s16, %s338_s16 }
  0x5f   :  { %368 = vmatmul.mubr.msk.bf16.vlgmr.msra.gmra.mrb[0].mxu0 %vm105_vm1, %v90_v2  ;;  %v98_v7 = vrot.slane %v91_v6, %v97_v5  ;;  %v167_v26 = vrot.slane %v91_v6, %v166_v24  ;;  %v172_v28 = vrot.slane %v91_v6, %v171_v25  ;;  %v183_v35 = vrot.slane %v92_v34, %v97_v5  ;;  %p517_p12 = scmp.ne.s32.totalorder %s338_s16, %s516_s17  ;;  %p522_p0 = scmp.lt.s32.totalorder %s516_s17, %s516_s17 }
  0x60   :  { %383 = vmatprep.mubr.msk.bf16.mxu0 %vm554_vm0, %v553_v0  ;;  %374 = vmatpush3.bf16.msra.mxu1 %v399_v20  ;;  %v255_v52 = vrot.slane %v92_v34, %v166_v24  ;;  %v260_v54 = vrot.slane %v92_v34, %v171_v25 }
  0x61   :  { %380 = vmatpush3.bf16.msra.mxu0 %v400_v47  ;;  %p523_p1 = por %p522_p0, %p521_p13 }
  0x62   :  { %381 = vmatprep.subr.bf16.mxu0 %v553_v0 }
  0x63   :  { %p524_p2 = pnand %p523_p1, %p517_p12 }
  0x65   :  { %382 = vmatpush3.bf16.msra.mxu0 %v401_v48 }
 0x132   :  { %v143_v8 = vpop.f32.mrb[0].mxu0 }
 0x133   :  { %v144_v9 = vadd.f32 %v143_v8, %v98_v7  ;;  %v369_v10 = vpop.f32.mrb[1].mxu0 }
 0x134   :  { %v146_v11 = vpop.f32.mrb[2].mxu0 }
 0x135   :  { %v370_v12 = vpop.f32.mrb[3].mxu0  ;;  %v150_v13 = vsel %vm149_vm2, %v144_v9, 0.0 }
 0x136   :  { %151 = vadd.xlane.f32.xlu0 %v150_v13 }
 0x1c3   :  { %v152_v14 = vpop.xlane.xlu0 %151 }
 0x1c4   :  { %v154_v15 = vmul.f32 0.03125, %v152_v14 }
 0x1c6   :  { %v155_v16 = vsub.f32 %v144_v9, %v154_v15 }
 0x1c8   :  { %v156_v17 = vmul.f32 %v155_v16, %v155_v16 }
 0x1ca   :  { %v157_v18 = vsel %vm149_vm2, %v156_v17, 0.0 }
 0x1cb   :  { %158 = vadd.xlane.f32.xlu0 %v157_v18 }
 0x258   :  { %v159_v21 = vpop.xlane.xlu0 %158 }
 0x259   :  { %v160_v22 = vmul.f32 0.03125, %v159_v21 }
 0x25b   :  { %v161_v23 = vadd.f32 1e-05, %v160_v22 }
 0x25d   :  { %402 = vrsqrt.f32 %v161_v23 }
 0x267   :  { %v403_v27 = vpop.eup %402 }
 0x268   :  { %v163_v29 = vmul.f32 %v403_v27, %v155_v16 }
 0x26a   :  { %v168_v30 = vmul.f32 %v167_v26, %v163_v29 }
 0x26c   :  { %v173_v31 = vadd.f32 %v172_v28, %v168_v30 }
 0x26e   :  { %v174_v32 = vmax.f32 %v173_v31, 0.0 }
 0x270   :  { %v175_v33 = vpack.c.bf16 %v174_v32, %v174_v32 }
 0x272   :  { %376 = vmatmul.mubr.msk.bf16.vlgmr.msra.gmra.mrb[0].mxu1 %vm149_vm2, %v175_v33 }
 0x345   :  { %v233_v36 = vpop.f32.mrb[0].mxu1 }
 0x346   :  { %v234_v37 = vadd.f32 %v233_v36, %v183_v35  ;;  %v377_v38 = vpop.f32.mrb[1].mxu1 }
 0x347   :  { %v236_v39 = vpop.f32.mrb[2].mxu1 }
 0x348   :  { %v378_v40 = vpop.f32.mrb[3].mxu1  ;;  %v239_v41 = vsel %vm149_vm2, %v234_v37, 0.0 }
 0x349   :  { %240 = vadd.xlane.f32.xlu1 %v239_v41 }
 0x3d6   :  { %v241_v42 = vpop.xlane.xlu1 %240 }
 0x3d7   :  { %v242_v43 = vmul.f32 0.03125, %v241_v42 }
 0x3d9   :  { %v243_v44 = vsub.f32 %v234_v37, %v242_v43 }
 0x3db   :  { %v244_v45 = vmul.f32 %v243_v44, %v243_v44 }
 0x3dd   :  { %v245_v46 = vsel %vm149_vm2, %v244_v45, 0.0 }
 0x3de   :  { %246 = vadd.xlane.f32.xlu1 %v245_v46 }
 0x46b   :  { %v247_v49 = vpop.xlane.xlu1 %246 }
 0x46c   :  { %v248_v50 = vmul.f32 0.03125, %v247_v49 }
 0x46e   :  { %v249_v51 = vadd.f32 1e-05, %v248_v50 }
 0x470   :  { %404 = vrsqrt.f32 %v249_v51 }
 0x47a   :  { %v405_v53 = vpop.eup %404 }
 0x47b   :  { %v251_v55 = vmul.f32 %v405_v53, %v243_v44 }
 0x47d   :  { %v256_v56 = vmul.f32 %v255_v52, %v251_v55 }
 0x47f   :  { %v261_v57 = vadd.f32 %v260_v54, %v256_v56 }
 0x481   :  { %v262_v58 = vmax.f32 %v261_v57, 0.0 }
 0x483   :  { %v263_v59 = vpack.c.bf16 %v262_v58, %v262_v58 }
 0x485   :  { %384 = vmatmul.mubr.msk.bf16.vlgmr.msra.gmra.mrb[4].mxu0 %vm149_vm2, %v263_v59 }
 0x558   :  { %v324_v61 = vpop.f32.mrb[4].mxu0 }
 0x559   :  { %v325_v62 = vadd.f32 %v353_v60, %v324_v61  ;;  %v385_v63 = vpop.f32.mrb[5].mxu0 }
 0x55a   :  { %v327_v0 = vpop.f32.mrb[6].mxu0 }
 0x55b   :  { %330 = vst [vmem:[#allocation11] sm:$0xff] %v325_v62  ;;  %v386_v1 = vpop.f32.mrb[7].mxu0 }
 0x55c   :  { %527 = shalt.err (!%p524_p2)
}
 0x55d   :  { %s528_s6 = scalar_lea.hbm %s703_s7, 128 }
 0x55e   :  { %p529_p3 = scmp.ne.s32.totalorder %s703_s7, %s528_s6  ;;  %p532_p4 = scmp.lt.u32.totalorder %s528_s6, %s703_s7 }
 0x560   :  { %p534_p5 = pnand %p532_p4, %p529_p3 }
 0x562   :  { %537 = shalt.err (!%p534_p5)
}
 0x563   :  { %340 = dma.vmem_to_hbm [thread:$0]  %s338_s16, 128, %s703_s7, [#allocation4]  }
 0x564   :  { %544 = dma.done.wait [#allocation4], 128  }
 0x565   :  { %545 = vsyncadd [#allocation4], 4294967168 }
 0x566   :  { %344 = vsyncpa [#allocation3], 1 }
 0x567   :  { %345 = vsyncpa [#allocation6], 1 }
 0x568   :  { %346 = vsyncpa [#allocation9], 1 }
 0x569   :  { %347 = vsyncpa [#allocation4], 1 }

</bundles_post_ra>
